<compile_context>
chip_gen: v7x
topology: tpu7x:2x2x1
jax: 0.10.0
libtpu: 0.0.40
codegen_flags: <defaults>
</compile_context>

<pallas_src>
import functools

import jax
import jax.numpy as jnp
from jax.experimental import pallas as pl
from jax.experimental.pallas import tpu as pltpu  # noqa: F401  (kept for parity)


N_RELATIONS = 5
DOUT_PAD = 128  # lane-dense output width (multiple of 128)


# ----------------------------- Pallas kernel --------------------------------

def _relation_mlp_kernel(x_ref, w1_ref, b1aug_ref, w2_ref, b2_ref, o_ref):
    # x_ref:     (M, S)        -- all R*B relation rows (sample part only)
    # w1_ref:    (S, H)        -- first-layer weights for the sample columns
    # b1aug_ref: (R, H)        -- per-relation folded bias: b1 + w1[S + r, :]
    # w2_ref:    (H, DOUT_PAD) -- zero-padded to 128 output lanes
    # b2_ref:    (1, DOUT_PAD) -- zero-padded to 128 output lanes
    # o_ref:     (M, DOUT_PAD) -- lane-dense unmasked store; wrapper slices Dout
    M = x_ref.shape[0]
    R = b1aug_ref.shape[0]
    H = w1_ref.shape[1]
    B = M // R  # rows per relation (relations are contiguous blocks of B rows)

    h = jnp.dot(x_ref[...], w1_ref[...], preferred_element_type=jnp.float32)

    # Per-relation bias: replicate each bias row across its B batch rows
    # (sublane broadcast + concat along the sublane axis -- cheap XLU work).
    bias = jnp.concatenate(
        [jnp.broadcast_to(b1aug_ref[r], (B, H)) for r in range(R)], axis=0)

    h = jnp.tanh(h + bias)                                     # (M, H)
    y = jnp.dot(h, w2_ref[...], preferred_element_type=jnp.float32)
    o_ref[...] = (y + b2_ref[...]).astype(o_ref.dtype)         # identity out-act


def relation_mlp_pallas(x_flat, w1_s, b1_aug, w2p, b2p):
    """Apply the relation MLP to flattened relation rows.

    x_flat: (M, S) float32   (M = R*B, S = 2*z_dim - R)
    w1_s:   (S, H)           b1_aug: (R, H)
    w2p:    (H, DOUT_PAD)    b2p:    (1, DOUT_PAD)
    returns (M, DOUT_PAD) float32
    """
    M, S = x_flat.shape
    H = w1_s.shape[1]
    R = b1_aug.shape[0]
    assert M % R == 0

    cost = pl.CostEstimate(
        flops=2 * M * (S * H + H * DOUT_PAD),
        transcendentals=M * H,
        bytes_accessed=4 * (M * S + S * H + R * H + H * DOUT_PAD
                            + DOUT_PAD + M * DOUT_PAD),
    )

    # Single invocation (no grid): everything fits VMEM easily at these shapes.
    return pl.pallas_call(
        _relation_mlp_kernel,
        out_shape=jax.ShapeDtypeStruct((M, DOUT_PAD), jnp.float32),
        cost_estimate=cost,
    )(x_flat, w1_s, b1_aug, w2p, b2p)


# One jitted function per forward(): stack, kernel, and per-relation split all
# happen in a single device dispatch.
@functools.partial(jax.jit, static_argnames=("z_dim",))
def _forward_impl(rel_samples, w1_s, b1_aug, w2p, b2p, *, z_dim):
    samples = jnp.stack(rel_samples, axis=0)                   # (R, B, S)
    R, B, S = samples.shape
    x = samples.reshape(R * B, S)
    y = relation_mlp_pallas(x, w1_s, b1_aug, w2p, b2p)         # (M, DOUT_PAD)
    y = y[:, :z_dim].reshape(R, B, z_dim)
    return tuple(y[i] for i in range(R))


# --------------------------- Module (glue in JAX) ---------------------------

class AdaptiveRelationalPriorPallas:
    """JAX/Pallas port of AdaptiveRelationalPrior's forward pass."""

    N_RELATIONS = N_RELATIONS

    def __init__(self, z_dim, n_classes, hidden=1024, gm_cov=1.0, seed=0):
        self.z_dim = z_dim
        self.n_classes = n_classes
        key = jax.random.PRNGKey(seed)
        k_loc, k_w1, k_b1, k_w2, k_b2 = jax.random.split(key, 5)

        # _init_mog_random_prior: per-class loc ~ U(-1, 1), diag cov = gm_cov*I.
        # (Not used by forward; kept for parameter parity with the module.)
        self.gaussian_locs = (
            jax.random.uniform(k_loc, (n_classes, z_dim), jnp.float32) * 2.0 - 1.0
        )
        self.gaussian_cov_diag = jnp.full((z_dim,), gm_cov, jnp.float32)

        # relation_layer = MLP(dimensions=(2*z_dim, 1024, z_dim), tanh hidden,
        # identity out).  Deterministic synthetic init (Torch-Linear-like).
        din, h, dout = 2 * z_dim, hidden, z_dim
        assert dout <= DOUT_PAD
        lim1 = 1.0 / jnp.sqrt(jnp.float32(din))
        lim2 = 1.0 / jnp.sqrt(jnp.float32(h))
        self.w1 = jax.random.uniform(k_w1, (din, h), jnp.float32, -lim1, lim1)
        self.b1 = jax.random.uniform(k_b1, (h,), jnp.float32, -lim1, lim1)
        self.w2 = jax.random.uniform(k_w2, (h, dout), jnp.float32, -lim2, lim2)
        self.b2 = jax.random.uniform(k_b2, (dout,), jnp.float32, -lim2, lim2)

        # ---- Hoisted per-call constants (perf review #1 and #3) -------------
        S = din - self.N_RELATIONS               # sample feature width (27)
        # First-layer weights split: sample columns vs. one-hot tag columns;
        # the tag contribution is folded into a per-relation hidden bias.
        self.w1_s = self.w1[:S, :]                               # (S, H)
        self.b1_aug = self.b1[None, :] + self.w1[S:, :]          # (R, H)
        # Lane-dense second layer: pad to 128 output lanes with zeros.
        self.w2p = jnp.pad(self.w2, ((0, 0), (0, DOUT_PAD - dout)))
        self.b2p = jnp.pad(self.b2, ((0, DOUT_PAD - dout),)).reshape(1, DOUT_PAD)

    def forward(self, rel_samples):
        """rel_samples: tuple of 5 arrays, each (B, 2*z_dim - 5).

        Each sample is (logically) concatenated with its one-hot relation tag
        and fed through the shared relation MLP.  Returns tuple of 5 (B, z_dim).
        Single jitted device dispatch per call."""
        assert len(rel_samples) == self.N_RELATIONS
        return _forward_impl(tuple(rel_samples), self.w1_s, self.b1_aug,
                             self.w2p, self.b2p, z_dim=self.z_dim)

    # TODO(synk): sample()/classify() and the adaptive MoG re-init involve
    # MultivariateNormal sampling / log_prob over data; not part of forward.


def _reference_forward(prior, rel_samples):
    """Pure-JAX reference with the original (concat one-hot) formulation."""
    B = rel_samples[0].shape[0]
    eye = jnp.eye(prior.N_RELATIONS, dtype=jnp.float32)
    outs = []
    for i in range(prior.N_RELATIONS):
        x = jnp.concatenate(
            [rel_samples[i], jnp.broadcast_to(eye[i], (B, prior.N_RELATIONS))],
            axis=-1)
        h = jnp.tanh(x @ prior.w1 + prior.b1)
        outs.append(h @ prior.w2 + prior.b2)
    return tuple(outs)


# ----------------------------------- main ------------------------------------

if __name__ == "__main__":
    z_dim = 16          # cfg.model.z_dim
    n_classes = 5       # cfg.data.n_classes
    batch = 8

    prior = AdaptiveRelationalPriorPallas(z_dim=z_dim, n_classes=n_classes, seed=0)

    key = jax.random.PRNGKey(0)
    keys = jax.random.split(key, prior.N_RELATIONS)
    sample_dim = 2 * z_dim - prior.N_RELATIONS  # cat([sample, onehot(5)]) -> 2*z_dim
    rel_samples = tuple(
        jax.random.normal(keys[i], (batch, sample_dim), jnp.float32)
        for i in range(prior.N_RELATIONS)
    )

    preds = prior.forward(rel_samples)
    preds = jax.block_until_ready(preds)

    ref = _reference_forward(prior, rel_samples)
    for p, r in zip(preds, ref):
        assert p.shape == (batch, z_dim)
        assert jnp.max(jnp.abs(p - r)) < 1e-4

    print("KERNEL_OK")
</pallas_src>

<mosaic_0001>
module attributes {stable_mosaic.version = 11 : i64} {
  func.func @_relation_mlp_kernel(%arg0: memref<40x27xf32, #tpu.memory_space<vmem>>, %arg1: memref<27x1024xf32, #tpu.memory_space<vmem>>, %arg2: memref<5x1024xf32, #tpu.memory_space<vmem>>, %arg3: memref<1024x128xf32, #tpu.memory_space<vmem>>, %arg4: memref<1x128xf32, #tpu.memory_space<vmem>>, %arg5: memref<40x128xf32, #tpu.memory_space<vmem>>) attributes {dimension_semantics = [], scalar_prefetch = 0 : i64, scratch_operands = 0 : i64, tpu.core_type = #tpu.core_type<tc>} {
    %c0 = arith.constant 0 : index
    %c0_0 = arith.constant 0 : index
    %0 = vector.load %arg0[%c0, %c0_0] : memref<40x27xf32, #tpu.memory_space<vmem>>, vector<40x27xf32>
    %c0_1 = arith.constant 0 : index
    %c0_2 = arith.constant 0 : index
    %1 = vector.load %arg1[%c0_1, %c0_2] : memref<27x1024xf32, #tpu.memory_space<vmem>>, vector<27x1024xf32>
    %cst = arith.constant dense<0.000000e+00> : vector<40x1024xf32>
    %2 = tpu.matmul %0, %1, %cst {dimension_numbers = #tpu.dot_dimension_numbers<[1], [0], [0], [1], [0, 0, 1, 1], [], []>} : vector<40x27xf32>, vector<27x1024xf32>, vector<40x1024xf32> -> vector<40x1024xf32>
    %c0_3 = arith.constant 0 : index
    %c0_4 = arith.constant 0 : index
    %3 = vector.load %arg2[%c0_3, %c0_4] : memref<5x1024xf32, #tpu.memory_space<vmem>>, vector<1x1024xf32>
    %4 = vector.shape_cast %3 : vector<1x1024xf32> to vector<1024xf32>
    %5 = vector.shape_cast %4 : vector<1024xf32> to vector<1x1024xf32>
    %6 = vector.broadcast %5 : vector<1x1024xf32> to vector<8x1024xf32>
    %c1 = arith.constant 1 : index
    %c0_5 = arith.constant 0 : index
    %7 = vector.load %arg2[%c1, %c0_5] : memref<5x1024xf32, #tpu.memory_space<vmem>>, vector<1x1024xf32>
    %8 = vector.shape_cast %7 : vector<1x1024xf32> to vector<1024xf32>
    %9 = vector.shape_cast %8 : vector<1024xf32> to vector<1x1024xf32>
    %10 = vector.broadcast %9 : vector<1x1024xf32> to vector<8x1024xf32>
    %c2 = arith.constant 2 : index
    %c0_6 = arith.constant 0 : index
    %11 = vector.load %arg2[%c2, %c0_6] : memref<5x1024xf32, #tpu.memory_space<vmem>>, vector<1x1024xf32>
    %12 = vector.shape_cast %11 : vector<1x1024xf32> to vector<1024xf32>
    %13 = vector.shape_cast %12 : vector<1024xf32> to vector<1x1024xf32>
    %14 = vector.broadcast %13 : vector<1x1024xf32> to vector<8x1024xf32>
    %c3 = arith.constant 3 : index
    %c0_7 = arith.constant 0 : index
    %15 = vector.load %arg2[%c3, %c0_7] : memref<5x1024xf32, #tpu.memory_space<vmem>>, vector<1x1024xf32>
    %16 = vector.shape_cast %15 : vector<1x1024xf32> to vector<1024xf32>
    %17 = vector.shape_cast %16 : vector<1024xf32> to vector<1x1024xf32>
    %18 = vector.broadcast %17 : vector<1x1024xf32> to vector<8x1024xf32>
    %c4 = arith.constant 4 : index
    %c0_8 = arith.constant 0 : index
    %19 = vector.load %arg2[%c4, %c0_8] : memref<5x1024xf32, #tpu.memory_space<vmem>>, vector<1x1024xf32>
    %20 = vector.shape_cast %19 : vector<1x1024xf32> to vector<1024xf32>
    %21 = vector.shape_cast %20 : vector<1024xf32> to vector<1x1024xf32>
    %22 = vector.broadcast %21 : vector<1x1024xf32> to vector<8x1024xf32>
    %23 = tpu.concatenate %6, %10, %14, %18, %22 in 0 : vector<8x1024xf32>, vector<8x1024xf32>, vector<8x1024xf32>, vector<8x1024xf32>, vector<8x1024xf32> -> vector<40x1024xf32>
    %24 = arith.addf %2, %23 : vector<40x1024xf32>
    %25 = math.tanh %24 : vector<40x1024xf32>
    %c0_9 = arith.constant 0 : index
    %c0_10 = arith.constant 0 : index
    %26 = vector.load %arg3[%c0_9, %c0_10] : memref<1024x128xf32, #tpu.memory_space<vmem>>, vector<1024x128xf32>
    %cst_11 = arith.constant dense<0.000000e+00> : vector<40x128xf32>
    %27 = tpu.matmul %25, %26, %cst_11 {dimension_numbers = #tpu.dot_dimension_numbers<[1], [0], [0], [1], [0, 0, 1, 1], [], []>} : vector<40x1024xf32>, vector<1024x128xf32>, vector<40x128xf32> -> vector<40x128xf32>
    %c0_12 = arith.constant 0 : index
    %c0_13 = arith.constant 0 : index
    %28 = vector.load %arg4[%c0_12, %c0_13] : memref<1x128xf32, #tpu.memory_space<vmem>>, vector<1x128xf32>
    %29 = vector.broadcast %28 : vector<1x128xf32> to vector<40x128xf32>
    %30 = arith.addf %27, %29 : vector<40x128xf32>
    %c0_14 = arith.constant 0 : index
    %c0_15 = arith.constant 0 : index
    %31 = vector.load %arg5[%c0_14, %c0_15] : memref<40x128xf32, #tpu.memory_space<vmem>>, vector<40x128xf32>
    tpu.vector_store %arg5[%c0_14, %c0_15], %30 {strides = array<i32>} : memref<40x128xf32, #tpu.memory_space<vmem>>, vector<40x128xf32>,
    return
  }
}

</mosaic_0001>

<bundles_post_ra>
// kernel: _forward_impl.1
= control target key start
LH: loop header
LB: loop body
LE: loop exit
PB: predicated region body
PF: predicated region fallthrough
CT: control target
= control target key end

     0   :  { %10 = vsyncpa [#allocation3], 0  ;;  %s2217_s0 = inlined_call_operand.vmem [shape: f32[40,27], index: 0, kind: input, shape index: {}]   ;;  %s2218_s1 = inlined_call_operand.hbm [shape: f32[27,1024], index: 1, kind: input, shape index: {}]   ;;  %s2219_s2 = inlined_call_operand.vmem [shape: f32[5,1024], index: 2, kind: input, shape index: {}]   ;;  %s2220_s3 = inlined_call_operand.hbm [shape: f32[1024,128], index: 3, kind: input, shape index: {}]   ;;  %s2221_s4 = inlined_call_operand.vmem [shape: f32[1,128], index: 4, kind: input, shape index: {}]   ;;  %s2222_s5 = inlined_call_operand.vmem [shape: f32[40,128], index: 5, kind: output, shape index: {}]  }
   0x1   :  { %11 = vsyncpa [#allocation5], 0  ;;  %s1805_s18 = smov [#allocation2]   ;;  %s1757_s22 = scalar_lea.hbm %s2218_s1, 4096 }
   0x2   :  { %s19_s19 = sshll.u32 %s1805_s18, 4  ;;  %p1758_p0 = scmp.ne.s32.totalorder %s2218_s1, %s1757_s22  ;;  %s20_s19 = int_to_ptr.vmem [resolvable:$true] %s19_s19 }
   0x3   :  { %p1761_p1 = scmp.lt.u32.totalorder %s1757_s22, %s2218_s1 }
   0x5   :  { %p1763_p2 = pnand %p1761_p1, %p1758_p0 }
   0x7   :  { %1766 = shalt.err (!%p1763_p2)
}
   0x8   :  { %s1767_s27 = scalar_lea.vmem %s20_s19, 4096  ;;  %p1772_p4 = scmp.lt.s32.totalorder %s20_s19, %s20_s19 }
   0x9   :  { %p1768_p3 = scmp.ne.s32.totalorder %s20_s19, %s1767_s27  ;;  %p1773_p5 = scmp.lt.s32.totalorder %s1767_s27, %s1767_s27 }
   0xb   :  { %p1774_p6 = por %p1773_p5, %p1772_p4 }
   0xd   :  { %p1775_p7 = pnand %p1774_p6, %p1768_p3 }
   0xf   :  { %1778 = shalt.err (!%p1775_p7)
}
  0x10   :  { %s1806_s28 = smov 1024   ;;  %s1807_s29 = smov 64  }
  0x11   :  { %25 = dma.hbm_to_vmem [thread:$0]  %s2218_s1, 4096, %s20_s19, [#allocation3], %s1806_s28, %s1806_s28, %s1807_s29  }
  0x12   :  { %s1808_s7 = smov [#allocation4]   ;;  %s1779_s11 = scalar_lea.hbm %s2220_s3, 16384 }
  0x13   :  { %s33_s8 = sshll.u32 %s1808_s7, 4  ;;  %p1780_p8 = scmp.ne.s32.totalorder %s2220_s3, %s1779_s11  ;;  %s34_s8 = int_to_ptr.vmem [resolvable:$true] %s33_s8 }
  0x14   :  { %p1783_p9 = scmp.lt.u32.totalorder %s1779_s11, %s2220_s3 }
  0x16   :  { %p1785_p10 = pnand %p1783_p9, %p1780_p8 }
  0x18   :  { %1788 = shalt.err (!%p1785_p10)
}
  0x19   :  { %s1789_s16 = scalar_lea.vmem %s34_s8, 16384  ;;  %p1794_p12 = scmp.lt.s32.totalorder %s34_s8, %s34_s8 }
  0x1a   :  { %p1790_p11 = scmp.ne.s32.totalorder %s34_s8, %s1789_s16  ;;  %p1795_p13 = scmp.lt.s32.totalorder %s1789_s16, %s1789_s16 }
  0x1c   :  { %p1796_p0 = por %p1795_p13, %p1794_p12 }
  0x1e   :  { %p1797_p1 = pnand %p1796_p0, %p1790_p11 }
  0x20   :  { %1800 = shalt.err (!%p1797_p1)
}
  0x21   :  { %s1809_s1 = smov 128   ;;  %s1810_s17 = smov 8  }
  0x22   :  { %39 = dma.hbm_to_vmem [thread:$0]  %s2220_s3, 16384, %s34_s8, [#allocation5], %s1809_s1, %s1809_s1, %s1810_s17  }
  0x23   :  { %1801 = dma.done.wait [#allocation3], 4096  }
  0x24   :  { %1802 = vsyncadd [#allocation3], 4294963200 }
  0x25   :  { %1803 = dma.done.wait [#allocation5], 16384  }
  0x26   :  { %1804 = vsyncadd [#allocation5], 4294950912  ;;  %v1811_v0 = vmov 0.0   ;;  %vm325_vm0 = vcmask 1042432   ;;  %vm1812_vm1 = vmmov 1   ;;  %v54_v2 = vld [vmem:[#allocation2 + $0x8] sm:$0xff] }
  0x27   :  { %414 = vmatprep.mubr.f32.mxu0 %v1811_v0  ;;  %509 = vmatprep.mubr.f32.mxu1 %v1811_v0  ;;  %vm1869_vm2 = vmpackc.low %vm325_vm0, %vm1812_vm1  ;;  %v62_v3 = vld [vmem:[#allocation2 + $0x48] sm:$0xff]  ;;  %v56_v4 = vld [vmem:[#allocation2 + $0x18] sm:$0xff]  ;;  %vm309_vm3 = vcmask 220160  }
  0x28   :  { %v1501_v5 = vpack.c.bf16 %v62_v3, %v54_v2  ;;  %v64_v6 = vld [vmem:[#allocation2 + $0x58] sm:$0xff]  ;;  %v53_v7 = vld [vmem:[#allocation2] sm:$0xff]  ;;  %v55_v11 = vld [vmem:[#allocation2 + $0x10] sm:$0xff] }
  0x29   :  { %v61_v8 = vld [vmem:[#allocation2 + $0x40] sm:$0xff]  ;;  %v1511_v9 = vpack.c.bf16 %v64_v6, %v56_v4  ;;  %v63_v12 = vld [vmem:[#allocation2 + $0x50] sm:$0xff]  ;;  %v70_v13 = vld [vmem:[#allocation2 + $0x88] sm:$0xff] }
  0x2a   :  { %v1503_v10 = vpack.c.bf16 %v61_v8, %v53_v7  ;;  %1502 = vmatprep.subr.bf16.mxu0 %v1501_v5  ;;  %v1513_v14 = vpack.c.bf16 %v63_v12, %v55_v11  ;;  %v78_v15 = vld [vmem:[#allocation2 + $0xc8] sm:$0x7]  ;;  %v72_v16 = vld [vmem:[#allocation2 + $0x98] sm:$0xff]  ;;  %v69_v20 = vld [vmem:[#allocation2 + $0x80] sm:$0xff] }
  0x2b   :  { %v80_v17 = vld [vmem:[#allocation2 + $0xd8] sm:$0x7]  ;;  %1512 = vmatprep.subr.bf16.mxu1 %v1511_v9  ;;  %v1505_v18 = vpack.c.bf16 %v78_v15, %v70_v13  ;;  %v77_v21 = vld [vmem:[#allocation2 + $0xc0] sm:$0x7]  ;;  %v71_v22 = vld [vmem:[#allocation2 + $0x90] sm:$0xff] }
  0x2c   :  { %1504 = vmatpush1.bf16.msra.mxu0 %v1503_v10  ;;  %v1515_v19 = vpack.c.bf16 %v80_v17, %v72_v16  ;;  %1514 = vmatpush1.bf16.msra.mxu1 %v1513_v14  ;;  %v1508_v23 = vpack.c.bf16 %v77_v21, %v69_v20  ;;  %v79_v24 = vld [vmem:[#allocation2 + $0xd0] sm:$0x7]  ;;  %v58_v25 = vld [vmem:[#allocation2 + $0x28] sm:$0xff]  ;;  %v57_v28 = vld [vmem:[#allocation2 + $0x20] sm:$0xff] }
  0x2d   :  { %1507 = vmatprep.subr.msk.bf16.mxu0 %vm1869_vm2, %v1505_v18  ;;  %v1518_v26 = vpack.c.bf16 %v79_v24, %v71_v22  ;;  %v66_v27 = vld [vmem:[#allocation2 + $0x68] sm:$0xff]  ;;  %v65_v29 = vld [vmem:[#allocation2 + $0x60] sm:$0xff]  ;;  %v60_v31 = vld [vmem:[#allocation2 + $0x38] sm:$0xff] }
  0x2e   :  { %1517 = vmatprep.subr.msk.bf16.mxu1 %vm1869_vm2, %v1515_v19  ;;  %v1521_v30 = vpack.c.bf16 %v66_v27, %v58_v25  ;;  %v68_v32 = vld [vmem:[#allocation2 + $0x78] sm:$0xff]  ;;  %v1882_v33 = vld [vmem:[%s2217_s0] sm:$0xff]  ;;  %v59_v35 = vld [vmem:[#allocation2 + $0x30] sm:$0xff]  ;;  %v1523_v37 = vpack.c.bf16 %v65_v29, %v57_v28 }
  0x2f   :  { %v1531_v34 = vpack.c.bf16 %v68_v32, %v60_v31  ;;  %v67_v36 = vld [vmem:[#allocation2 + $0x70] sm:$0xff]  ;;  %v74_v38 = vld [vmem:[#allocation2 + $0xa8] sm:$0xff]  ;;  %v73_v42 = vld [vmem:[#allocation2 + $0xa0] sm:$0xff] }
  0x30   :  { %1510 = vmatpush1.bf16.msk.msra.mxu0 %vm1869_vm2, %v1508_v23  ;;  %1520 = vmatpush1.bf16.msk.msra.mxu1 %vm1869_vm2, %v1518_v26  ;;  %v82_v39 = vld [vmem:[#allocation2 + $0xe8] sm:$0x7]  ;;  %v1533_v40 = vpack.c.bf16 %v67_v36, %v59_v35  ;;  %v81_v43 = vld [vmem:[#allocation2 + $0xe0] sm:$0x7]  ;;  %v76_v44 = vld [vmem:[#allocation2 + $0xb8] sm:$0xff] }
  0x31   :  { %1522 = vmatprep.subr.bf16.mxu0 %v1521_v30  ;;  %1532 = vmatprep.subr.bf16.mxu1 %v1531_v34  ;;  %v1525_v41 = vpack.c.bf16 %v82_v39, %v74_v38  ;;  %v84_v45 = vld [vmem:[#allocation2 + $0xf8] sm:$0x7]  ;;  %v75_v46 = vld [vmem:[#allocation2 + $0xb0] sm:$0xff]  ;;  %v1894_v48 = vld [vmem:[%s2217_s0 + $0x8] sm:$0xff]  ;;  %v1528_v52 = vpack.c.bf16 %v81_v43, %v73_v42 }
  0x32   :  { %v83_v47 = vld [vmem:[#allocation2 + $0xf0] sm:$0x7]  ;;  %v1535_v49 = vpack.c.bf16 %v84_v45, %v76_v44  ;;  %v786_v50 = vld [vmem:[#allocation4 + $0x80] sm:$0xff]  ;;  %v787_v51 = vld [vmem:[#allocation4 + $0x88] sm:$0xff] }
  0x33   :  { %1286 = vmatmul.mubr.msk.f32.vlgmr.msra.gmra.mrb[0].mxu0 %vm309_vm3, %v1882_v33  ;;  %1293 = vmatmul.mubr.msk.f32.vlgmr.msra.gmra.mrb[0].mxu1 %vm309_vm3, %v1882_v33  ;;  %v818_v53 = vld [vmem:[#allocation4 + $0x180] sm:$0xff]  ;;  %v819_v54 = vld [vmem:[#allocation4 + $0x188] sm:$0xff]  ;;  %v1538_v55 = vpack.c.bf16 %v83_v47, %v75_v46  ;;  %v1541_v56 = vpack.c.bf16 %v787_v51, %v786_v50  ;;  %v1909_v58 = vld [vmem:[%s2217_s0 + $0x10] sm:$0xff] }
  0x34   :  { %420 = vmatprep.mubr.f32.mxu0 %v1811_v0  ;;  %1524 = vmatpush1.bf16.msra.mxu0 %v1523_v37  ;;  %v1573_v57 = vpack.c.bf16 %v819_v54, %v818_v53  ;;  %v1924_v59 = vld [vmem:[%s2217_s0 + $0x18] sm:$0xff]  ;;  %v1935_v60 = vld [vmem:[%s2217_s0 + $0x20] sm:$0xff]  ;;  %v771_v62 = vld [vmem:[#allocation4 + $0x8] sm:$0xff] }
  0x35   :  { %515 = vmatprep.mubr.f32.mxu1 %v1811_v0  ;;  %1534 = vmatpush1.bf16.msra.mxu1 %v1533_v40  ;;  %v770_v61 = vld [vmem:[#allocation4] sm:$0xff]  ;;  %v803_v1 = vld [vmem:[#allocation4 + $0x108] sm:$0xff]  ;;  %v788_v2 = vld [vmem:[#allocation4 + $0x90] sm:$0xff] }
  0x36   :  { %1527 = vmatprep.subr.msk.bf16.mxu0 %vm1869_vm2, %v1525_v41  ;;  %1537 = vmatprep.subr.msk.bf16.mxu1 %vm1869_vm2, %v1535_v49  ;;  %v802_v63 = vld [vmem:[#allocation4 + $0x100] sm:$0xff]  ;;  %v789_v3 = vld [vmem:[#allocation4 + $0x98] sm:$0xff]  ;;  %v820_v4 = vld [vmem:[#allocation4 + $0x190] sm:$0xff]  ;;  %v1543_v6 = vpack.c.bf16 %v771_v62, %v770_v61 }
  0x37   :  { %1287 = vmatmul.mubr.msk.f32.gmra.mrb[2].mxu0 %vm309_vm3, %v1894_v48  ;;  %1294 = vmatmul.mubr.msk.f32.gmra.mrb[2].mxu1 %vm309_vm3, %v1894_v48  ;;  %v821_v5 = vld [vmem:[#allocation4 + $0x198] sm:$0xff]  ;;  %v1575_v7 = vpack.c.bf16 %v803_v1, %v802_v63  ;;  %v1545_v8 = vpack.c.bf16 %v789_v3, %v788_v2  ;;  %v772_v9 = vld [vmem:[#allocation4 + $0x10] sm:$0xff]  ;;  %v790_v14 = vld [vmem:[#allocation4 + $0xa0] sm:$0xff] }
  0x38   :  { %426 = vmatprep.mubr.f32.mxu0 %v1811_v0  ;;  %521 = vmatprep.mubr.f32.mxu1 %v1811_v0  ;;  %v773_v10 = vld [vmem:[#allocation4 + $0x18] sm:$0xff]  ;;  %v804_v11 = vld [vmem:[#allocation4 + $0x110] sm:$0xff]  ;;  %v1577_v12 = vpack.c.bf16 %v821_v5, %v820_v4  ;;  %v791_v15 = vld [vmem:[#allocation4 + $0xa8] sm:$0xff] }
  0x39   :  { %1530 = vmatpush1.bf16.msk.msra.mxu0 %vm1869_vm2, %v1528_v52  ;;  %1540 = vmatpush1.bf16.msk.msra.mxu1 %vm1869_vm2, %v1538_v55  ;;  %v805_v13 = vld [vmem:[#allocation4 + $0x118] sm:$0xff]  ;;  %v822_v16 = vld [vmem:[#allocation4 + $0x1a0] sm:$0xff]  ;;  %v823_v17 = vld [vmem:[#allocation4 + $0x1a8] sm:$0xff]  ;;  %v1547_v18 = vpack.c.bf16 %v773_v10, %v772_v9  ;;  %v1549_v20 = vpack.c.bf16 %v791_v15, %v790_v14 }
  0x3a   :  { %1542 = vmatprep.subr.bf16.mxu0 %v1541_v56  ;;  %1574 = vmatprep.subr.bf16.mxu1 %v1573_v57  ;;  %v1579_v19 = vpack.c.bf16 %v805_v13, %v804_v11  ;;  %v774_v21 = vld [vmem:[#allocation4 + $0x20] sm:$0xff]  ;;  %v775_v22 = vld [vmem:[#allocation4 + $0x28] sm:$0xff]  ;;  %v1581_v24 = vpack.c.bf16 %v823_v17, %v822_v16  ;;  %v792_v26 = vld [vmem:[#allocation4 + $0xb0] sm:$0xff] }
  0x3b   :  { %1288 = vmatmul.mubr.msk.f32.gmra.mrb[4].mxu0 %vm309_vm3, %v1909_v58  ;;  %1295 = vmatmul.mubr.msk.f32.gmra.mrb[4].mxu1 %vm309_vm3, %v1909_v58  ;;  %v806_v23 = vld [vmem:[#allocation4 + $0x120] sm:$0xff]  ;;  %v807_v25 = vld [vmem:[#allocation4 + $0x128] sm:$0xff]  ;;  %v793_v27 = vld [vmem:[#allocation4 + $0xb8] sm:$0xff]  ;;  %v1551_v30 = vpack.c.bf16 %v775_v22, %v774_v21 }
  0x3c   :  { %432 = vmatprep.mubr.f32.mxu0 %v1811_v0  ;;  %527 = vmatprep.mubr.f32.mxu1 %v1811_v0  ;;  %v824_v28 = vld [vmem:[#allocation4 + $0x1b0] sm:$0xff]  ;;  %v825_v29 = vld [vmem:[#allocation4 + $0x1b8] sm:$0xff]  ;;  %v1583_v31 = vpack.c.bf16 %v807_v25, %v806_v23  ;;  %v1553_v32 = vpack.c.bf16 %v793_v27, %v792_v26  ;;  %v794_v38 = vld [vmem:[#allocation4 + $0xc0] sm:$0xff] }
  0x3d   :  { %v777_v34 = vld [vmem:[#allocation4 + $0x38] sm:$0xff]  ;;  %v808_v35 = vld [vmem:[#allocation4 + $0x130] sm:$0xff]  ;;  %v1585_v36 = vpack.c.bf16 %v825_v29, %v824_v28  ;;  %v795_v39 = vld [vmem:[#allocation4 + $0xc8] sm:$0xff] }
  0x3e   :  { %v809_v37 = vld [vmem:[#allocation4 + $0x138] sm:$0xff]  ;;  %v826_v40 = vld [vmem:[#allocation4 + $0x1c0] sm:$0xff]  ;;  %v827_v41 = vld [vmem:[#allocation4 + $0x1c8] sm:$0xff]  ;;  %v1557_v44 = vpack.c.bf16 %v795_v39, %v794_v38 }
  0x3f   :  { %1289 = vmatmul.mubr.msk.f32.gmra.mrb[6].mxu0 %vm309_vm3, %v1924_v59  ;;  %1296 = vmatmul.mubr.msk.f32.gmra.mrb[6].mxu1 %vm309_vm3, %v1924_v59  ;;  %v1587_v43 = vpack.c.bf16 %v809_v37, %v808_v35  ;;  %v1589_v45 = vpack.c.bf16 %v827_v41, %v826_v40  ;;  %v778_v46 = vld [vmem:[#allocation4 + $0x40] sm:$0xff]  ;;  %v779_v47 = vld [vmem:[#allocation4 + $0x48] sm:$0xff]  ;;  %v796_v52 = vld [vmem:[#allocation4 + $0xd0] sm:$0xff] }
  0x40   :  { %438 = vmatprep.mubr.f32.mxu0 %v1811_v0  ;;  %533 = vmatprep.mubr.f32.mxu1 %v1811_v0  ;;  %v1559_v49 = vpack.c.bf16 %v779_v47, %v778_v46  ;;  %v811_v50 = vld [vmem:[#allocation4 + $0x148] sm:$0xff]  ;;  %v828_v53 = vld [vmem:[#allocation4 + $0x1d0] sm:$0xff]  ;;  %v829_v55 = vld [vmem:[#allocation4 + $0x1d8] sm:$0xff] }
  0x41   :  { %v780_v56 = vld [vmem:[#allocation4 + $0x50] sm:$0xff]  ;;  %v781_v57 = vld [vmem:[#allocation4 + $0x58] sm:$0xff]  ;;  %v798_v63 = vld [vmem:[#allocation4 + $0xe0] sm:$0xff] }
  0x42   :  { %v812_v61 = vld [vmem:[#allocation4 + $0x150] sm:$0xff]  ;;  %v813_v62 = vld [vmem:[#allocation4 + $0x158] sm:$0xff]  ;;  %v799_v1 = vld [vmem:[#allocation4 + $0xe8] sm:$0xff] }
  0x43   :  { %1290 = vmatmul.mubr.msk.f32.gmra.mrb[8].mxu0 %vm309_vm3, %v1935_v60  ;;  %1297 = vmatmul.mubr.msk.f32.gmra.mrb[8].mxu1 %vm309_vm3, %v1935_v60  ;;  %v830_v2 = vld [vmem:[#allocation4 + $0x1e0] sm:$0xff]  ;;  %v1565_v3 = vpack.c.bf16 %v799_v1, %v798_v63  ;;  %v831_v4 = vld [vmem:[#allocation4 + $0x1e8] sm:$0xff]  ;;  %v800_v11 = vld [vmem:[#allocation4 + $0xf0] sm:$0xff] }
  0x44   :  { %604 = vmatprep.mubr.f32.mxu0 %v1811_v0  ;;  %699 = vmatprep.mubr.f32.mxu1 %v1811_v0  ;;  %v782_v5 = vld [vmem:[#allocation4 + $0x60] sm:$0xff]  ;;  %v815_v10 = vld [vmem:[#allocation4 + $0x168] sm:$0xff]  ;;  %v801_v13 = vld [vmem:[#allocation4 + $0xf8] sm:$0xff] }
  0x45   :  { %v814_v9 = vld [vmem:[#allocation4 + $0x160] sm:$0xff]  ;;  %v832_v14 = vld [vmem:[#allocation4 + $0x1f0] sm:$0xff]  ;;  %v833_v15 = vld [vmem:[#allocation4 + $0x1f8] sm:$0xff]  ;;  %v1569_v16 = vpack.c.bf16 %v801_v13, %v800_v11 }
  0x46   :  { %v1601_v17 = vpack.c.bf16 %v833_v15, %v832_v14  ;;  %v817_v22 = vld [vmem:[#allocation4 + $0x178] sm:$0xff]  ;;  %v851_v25 = vld [vmem:[#allocation4 + $0x288] sm:$0xff]  ;;  %v882_v26 = vld [vmem:[#allocation4 + $0x380] sm:$0xff] }
  0x47   :  { %1300 = vmatmul.mubr.msk.f32.vlgmr.msra.gmra.mrb[10].mxu0 %vm309_vm3, %v1882_v33  ;;  %1307 = vmatmul.mubr.msk.f32.vlgmr.msra.gmra.mrb[10].mxu1 %vm309_vm3, %v1882_v33  ;;  %v776_v33 = vld [vmem:[#allocation4 + $0x30] sm:$0xff]  ;;  %v883_v28 = vld [vmem:[#allocation4 + $0x388] sm:$0xff]  ;;  %v2048_v15 = vld [vmem:[#allocation4 + $0x200] sm:$0xff] }
  0x48   :  { %610 = vmatprep.mubr.f32.mxu0 %v1811_v0  ;;  %705 = vmatprep.mubr.f32.mxu1 %v1811_v0  ;;  %v1555_v42 = vpack.c.bf16 %v777_v34, %v776_v33  ;;  %v1637_v29 = vpack.c.bf16 %v883_v28, %v882_v26  ;;  %v86_v33 = vld [vmem:[%s2219_s2] ss:$8 sm:$0xf0]  ;;  %v1276_v38 = vld [vmem:[%s2219_s2 + $0x1] ss:$8 sm:$0xf] }
  0x49   :  { %1544 = vmatpush3.bf16.msra.mxu0 %v1543_v6  ;;  %1576 = vmatpush3.bf16.msra.mxu1 %v1575_v7  ;;  %v783_v6 = vld [vmem:[#allocation4 + $0x68] sm:$0xff]  ;;  %v1597_v7 = vpack.c.bf16 %v831_v4, %v830_v2 }
  0x4a   :  { %1546 = vmatprep.subr.bf16.mxu0 %v1545_v8  ;;  %1578 = vmatprep.subr.bf16.mxu1 %v1577_v12  ;;  %v1567_v8 = vpack.c.bf16 %v783_v6, %v782_v5  ;;  %v1599_v12 = vpack.c.bf16 %v815_v10, %v814_v9  ;;  %v1277_v39 = vld [vmem:[%s2219_s2 + $0x1] ss:$8 sm:$0xf0]  ;;  %v1282_v1 = vld [vmem:[%s2219_s2 + $0x4] ss:$8 sm:$0xf] }
  0x4b   :  { %1301 = vmatmul.mubr.msk.f32.gmra.mrb[12].mxu0 %vm309_vm3, %v1894_v48  ;;  %1308 = vmatmul.mubr.msk.f32.gmra.mrb[12].mxu1 %vm309_vm3, %v1894_v48  ;;  %v810_v48 = vld [vmem:[#allocation4 + $0x140] sm:$0xff] }
  0x4c   :  { %616 = vmatprep.mubr.f32.mxu0 %v1811_v0  ;;  %711 = vmatprep.mubr.f32.mxu1 %v1811_v0  ;;  %v1591_v51 = vpack.c.bf16 %v811_v50, %v810_v48 }
  0x4d   :  { %1548 = vmatpush3.bf16.msra.mxu0 %v1547_v18  ;;  %1580 = vmatpush3.bf16.msra.mxu1 %v1579_v19  ;;  %v784_v18 = vld [vmem:[#allocation4 + $0x70] sm:$0xff]  ;;  %v785_v19 = vld [vmem:[#allocation4 + $0x78] sm:$0xff] }
  0x4e   :  { %1550 = vmatprep.subr.bf16.mxu0 %v1549_v20  ;;  %1582 = vmatprep.subr.bf16.mxu1 %v1581_v24  ;;  %v816_v20 = vld [vmem:[#allocation4 + $0x170] sm:$0xff]  ;;  %v1571_v21 = vpack.c.bf16 %v785_v19, %v784_v18  ;;  %v850_v24 = vld [vmem:[#allocation4 + $0x280] sm:$0xff] }
  0x4f   :  { %1302 = vmatmul.mubr.msk.f32.gmra.mrb[14].mxu0 %vm309_vm3, %v1909_v58  ;;  %1309 = vmatmul.mubr.msk.f32.gmra.mrb[14].mxu1 %vm309_vm3, %v1909_v58  ;;  %v1593_v58 = vpack.c.bf16 %v829_v55, %v828_v53  ;;  %v1603_v23 = vpack.c.bf16 %v817_v22, %v816_v20  ;;  %v1605_v27 = vpack.c.bf16 %v851_v25, %v850_v24  ;;  %v1280_v53 = vld [vmem:[%s2219_s2 + $0x3] ss:$8 sm:$0xf] }
  0x50   :  { %622 = vmatprep.mubr.f32.mxu0 %v1811_v0  ;;  %717 = vmatprep.mubr.f32.mxu1 %v1811_v0  ;;  %v2056_v20 = vld [vmem:[#allocation4 + $0x308] sm:$0xff]  ;;  %v2060_v24 = vld [vmem:[#allocation4 + $0x298] sm:$0xff] }
  0x51   :  { %1552 = vmatpush3.bf16.msra.mxu0 %v1551_v30  ;;  %1584 = vmatpush3.bf16.msra.mxu1 %v1583_v31  ;;  %v89_v30 = vlaneseq }
  0x52   :  { %1554 = vmatprep.subr.bf16.mxu0 %v1553_v32  ;;  %1586 = vmatprep.subr.bf16.mxu1 %v1585_v36  ;;  %v85_v32 = vld [vmem:[%s2219_s2] ss:$8 sm:$0xf] }
  0x53   :  { %1303 = vmatmul.mubr.msk.f32.gmra.mrb[16].mxu0 %vm309_vm3, %v1924_v59  ;;  %1310 = vmatmul.mubr.msk.f32.gmra.mrb[16].mxu1 %vm309_vm3, %v1924_v59  ;;  %v1563_v59 = vpack.c.bf16 %v781_v57, %v780_v56  ;;  %v1972_v31 = vshrl.u32 %v89_v30, 7  ;;  %v1980_v34 = vor.u32 %v86_v33, %v85_v32 }
  0x54   :  { %628 = vmatprep.mubr.f32.mxu0 %v1811_v0  ;;  %723 = vmatprep.mubr.f32.mxu1 %v1811_v0  ;;  %v797_v0 = vld [vmem:[#allocation4 + $0xd8] sm:$0xff] }
  0x55   :  { %1556 = vmatpush3.bf16.msra.mxu0 %v1555_v42  ;;  %1588 = vmatpush3.bf16.msra.mxu1 %v1587_v43  ;;  %v1561_v54 = vpack.c.bf16 %v797_v0, %v796_v52  ;;  %v1983_v35 = vsub.s32 0, %v1972_v31  ;;  %v1986_v36 = vsub.s32 2, %v1972_v31  ;;  %v1989_v37 = vsub.s32 1, %v1972_v31  ;;  %v1278_v43 = vld [vmem:[%s2219_s2 + $0x2] ss:$8 sm:$0xf] }
  0x56   :  { %1558 = vmatprep.subr.bf16.mxu0 %v1557_v44  ;;  %1590 = vmatprep.subr.bf16.mxu1 %v1589_v45  ;;  %v1998_v40 = vsub.s32 3, %v1972_v31  ;;  %v2002_v42 = vor.u32 %v1277_v39, %v1276_v38  ;;  %v1279_v44 = vld [vmem:[%s2219_s2 + $0x2] ss:$8 sm:$0xf0] }
  0x57   :  { %1304 = vmatmul.mubr.msk.f32.gmra.mrb[18].mxu0 %vm309_vm3, %v1935_v60  ;;  %1311 = vmatmul.mubr.msk.f32.gmra.mrb[18].mxu1 %vm309_vm3, %v1935_v60  ;;  %v1595_v60 = vpack.c.bf16 %v813_v62, %v812_v61  ;;  %v92_v41 = vrot.slane %v1980_v34, %v1983_v35  ;;  %v100_v45 = vrot.slane %v1980_v34, %v1986_v36 }
  0x58   :  { %v96_v46 = vrot.slane %v1980_v34, %v1989_v37  ;;  %v104_v47 = vrot.slane %v1980_v34, %v1998_v40  ;;  %v137_v0 = vrot.slane %v2002_v42, %v1983_v35  ;;  %v141_v57 = vrot.slane %v2002_v42, %v1989_v37 }
  0x59   :  { %1560 = vmatpush3.bf16.msra.mxu0 %v1559_v49  ;;  %1592 = vmatpush3.bf16.msra.mxu1 %v1591_v51  ;;  %v2016_v49 = vor.u32 %v1279_v44, %v1278_v43  ;;  %v149_v62 = vrot.slane %v2002_v42, %v1998_v40 }
  0x5a   :  { %1562 = vmatprep.subr.bf16.mxu0 %v1561_v54  ;;  %1594 = vmatprep.subr.bf16.mxu1 %v1593_v58  ;;  %v145_v58 = vrot.slane %v2002_v42, %v1986_v36 }
  0x5b   :  { %v182_v63 = vrot.slane %v2016_v49, %v1983_v35  ;;  %v186_v5 = vrot.slane %v2016_v49, %v1989_v37  ;;  %v190_v11 = vrot.slane %v2016_v49, %v1986_v36  ;;  %v194_v13 = vrot.slane %v2016_v49, %v1998_v40 }
  0x5d   :  { %1564 = vmatpush3.bf16.msra.mxu0 %v1563_v59  ;;  %1596 = vmatpush3.bf16.msra.mxu1 %v1595_v60  ;;  %v1281_v59 = vld [vmem:[%s2219_s2 + $0x3] ss:$8 sm:$0xf0] }
  0x5e   :  { %1566 = vmatprep.subr.bf16.mxu0 %v1565_v3  ;;  %1598 = vmatprep.subr.bf16.mxu1 %v1597_v7  ;;  %v2039_v6 = vor.u32 %v1281_v59, %v1280_v53  ;;  %v1283_v7 = vld [vmem:[%s2219_s2 + $0x4] ss:$8 sm:$0xf0] }
  0x5f   :  { %v2054_v18 = vor.u32 %v1283_v7, %v1282_v1 }
  0x60   :  { %v227_v25 = vrot.slane %v2039_v6, %v1983_v35  ;;  %v231_v26 = vrot.slane %v2039_v6, %v1989_v37  ;;  %v235_v30 = vrot.slane %v2039_v6, %v1986_v36  ;;  %v239_v38 = vrot.slane %v2039_v6, %v1998_v40 }
  0x61   :  { %1568 = vmatpush3.bf16.msra.mxu0 %v1567_v8  ;;  %1600 = vmatpush3.bf16.msra.mxu1 %v1599_v12  ;;  %v272_v44 = vrot.slane %v2054_v18, %v1983_v35  ;;  %v280_v53 = vrot.slane %v2054_v18, %v1986_v36  ;;  %v2086_v35 = vld [vmem:[#allocation4 + $0x310] sm:$0xff]  ;;  %v284_v36 = vrot.slane %v2054_v18, %v1998_v40  ;;  %v886_v40 = vld [vmem:[#allocation4 + $0x3a0] sm:$0xff] }
  0x62   :  { %1570 = vmatprep.subr.bf16.mxu0 %v1569_v16  ;;  %1602 = vmatprep.subr.bf16.mxu1 %v1601_v17  ;;  %v2050_v16 = vld [vmem:[#allocation4 + $0x208] sm:$0xff]  ;;  %v2052_v17 = vld [vmem:[#allocation4 + $0x300] sm:$0xff] }
  0x63   :  { %v1607_v32 = vpack.c.bf16 %v2050_v16, %v2048_v15  ;;  %v1639_v39 = vpack.c.bf16 %v2056_v20, %v2052_v17 }
  0x65   :  { %1572 = vmatpush3.bf16.msra.mxu0 %v1571_v21  ;;  %1604 = vmatpush3.bf16.msra.mxu1 %v1603_v23  ;;  %v2058_v23 = vld [vmem:[#allocation4 + $0x290] sm:$0xff] }
  0x66   :  { %1606 = vmatprep.subr.bf16.mxu0 %v1605_v27  ;;  %1638 = vmatprep.subr.bf16.mxu1 %v1637_v29 }
 0x106   :  { %v416_v48 = vpop.f32.mrb[0].mxu0  ;;  %v511_v51 = vpop.f32.mrb[0].mxu1 }
 0x107   :  { %v417_v50 = vadd.f32 %v416_v48, %v92_v41  ;;  %v418_v52 = vpop.f32.mrb[1].mxu0  ;;  %v512_v54 = vadd.f32 %v511_v51, %v100_v45  ;;  %v513_v56 = vpop.f32.mrb[1].mxu1  ;;  %v1609_v41 = vpack.c.bf16 %v2060_v24, %v2058_v23  ;;  %v870_v23 = vld [vmem:[#allocation4 + $0x320] sm:$0xff] }
 0x108   :  { %v419_v55 = vadd.f32 %v418_v52, %v96_v46  ;;  %v514_v61 = vadd.f32 %v513_v56, %v104_v47  ;;  %v884_v46 = vld [vmem:[#allocation4 + $0x390] sm:$0xff]  ;;  %v885_v47 = vld [vmem:[#allocation4 + $0x398] sm:$0xff] }
 0x109   :  { %1677 = vtanh.f32 %v417_v50  ;;  %v2078_v50 = vld [vmem:[#allocation4 + $0x210] sm:$0xff]  ;;  %v2088_v56 = vld [vmem:[#allocation4 + $0x318] sm:$0xff]  ;;  %v1641_v1 = vpack.c.bf16 %v885_v47, %v884_v46 }
 0x10a   :  { %1679 = vtanh.f32 %v512_v54  ;;  %v422_v60 = vpop.f32.mrb[2].mxu0  ;;  %v517_v4 = vpop.f32.mrb[2].mxu1 }
 0x10b   :  { %1681 = vtanh.f32 %v419_v55  ;;  %v423_v2 = vadd.f32 %v422_v60, %v137_v0  ;;  %v424_v3 = vpop.f32.mrb[3].mxu0  ;;  %v518_v9 = vadd.f32 %v517_v4, %v145_v58  ;;  %v519_v10 = vpop.f32.mrb[3].mxu1  ;;  %v276_v0 = vrot.slane %v2054_v18, %v1989_v37  ;;  %v2084_v55 = vld [vmem:[#allocation4 + $0x218] sm:$0xff] }
 0x10c   :  { %1683 = vtanh.f32 %v514_v61  ;;  %v425_v8 = vadd.f32 %v424_v3, %v141_v57  ;;  %v520_v12 = vadd.f32 %v519_v10, %v149_v62  ;;  %v2091_v61 = vsub.s32 5, %v1972_v31  ;;  %v855_v3 = vld [vmem:[#allocation4 + $0x2a8] sm:$0xff] }
 0x10d   :  { %1685 = vtanh.f32 %v423_v2  ;;  %v2096_v60 = vsub.s32 7, %v1972_v31  ;;  %v854_v2 = vld [vmem:[#allocation4 + $0x2a0] sm:$0xff]  ;;  %v1611_v7 = vpack.c.bf16 %v2084_v55, %v2078_v50 }
 0x10e   :  { %1687 = vtanh.f32 %v425_v8  ;;  %v428_v14 = vpop.f32.mrb[4].mxu0  ;;  %v523_v22 = vpop.f32.mrb[4].mxu1  ;;  %v1643_v8 = vpack.c.bf16 %v2088_v56, %v2086_v35  ;;  %v112_v17 = vrot.slane %v1980_v34, %v2091_v61  ;;  %v1613_v20 = vpack.c.bf16 %v855_v3, %v854_v2 }
 0x10f   :  { %1689 = vtanh.f32 %v518_v9  ;;  %v429_v19 = vadd.f32 %v428_v14, %v182_v63  ;;  %v430_v21 = vpop.f32.mrb[5].mxu0  ;;  %v524_v28 = vadd.f32 %v523_v22, %v190_v11  ;;  %v525_v29 = vpop.f32.mrb[5].mxu1  ;;  %v887_v9 = vld [vmem:[#allocation4 + $0x3a8] sm:$0xff] }
 0x110   :  { %1691 = vtanh.f32 %v520_v12  ;;  %v431_v27 = vadd.f32 %v430_v21, %v186_v5  ;;  %v526_v33 = vadd.f32 %v525_v29, %v194_v13  ;;  %v838_v21 = vld [vmem:[#allocation4 + $0x220] sm:$0xff]  ;;  %v839_v22 = vld [vmem:[#allocation4 + $0x228] sm:$0xff]  ;;  %v856_v29 = vld [vmem:[#allocation4 + $0x2b0] sm:$0xff] }
 0x111   :  { %1693 = vtanh.f32 %v429_v19 }
 0x112   :  { %1695 = vtanh.f32 %v431_v27  ;;  %v434_v43 = vpop.f32.mrb[6].mxu0  ;;  %v529_v52 = vpop.f32.mrb[6].mxu1  ;;  %v1645_v27 = vpack.c.bf16 %v887_v9, %v886_v40 }
 0x113   :  { %v1678_v45 = vpop.eup %1677  ;;  %1697 = vtanh.f32 %v524_v28  ;;  %v435_v48 = vadd.f32 %v434_v43, %v227_v25  ;;  %v436_v51 = vpop.f32.mrb[7].mxu0  ;;  %v530_v58 = vadd.f32 %v529_v52, %v235_v30  ;;  %v120_v25 = vrot.slane %v1980_v34, %v2096_v60  ;;  %v871_v28 = vld [vmem:[#allocation4 + $0x328] sm:$0xff]  ;;  %v857_v30 = vld [vmem:[#allocation4 + $0x2b8] sm:$0xff]  ;;  %v840_v52 = vld [vmem:[#allocation4 + $0x230] sm:$0xff] }
 0x114   :  { %v1680_v54 = vpop.eup %1679  ;;  %1699 = vtanh.f32 %v526_v33  ;;  %v437_v57 = vadd.f32 %v436_v51, %v231_v26  ;;  %v531_v59 = vpop.f32.mrb[7].mxu1  ;;  %v1647_v50 = vpack.c.bf16 %v871_v28, %v870_v23  ;;  %v1617_v51 = vpack.c.bf16 %v857_v30, %v856_v29  ;;  %v892_v23 = vld [vmem:[#allocation4 + $0x3d0] sm:$0xff] }
 0x115   :  { %v1682_v62 = vpop.eup %1681  ;;  %1701 = vtanh.f32 %v435_v48  ;;  %v532_v37 = vadd.f32 %v531_v59, %v239_v38  ;;  %v888_v38 = vld [vmem:[#allocation4 + $0x3b0] sm:$0xff]  ;;  %v858_v59 = vld [vmem:[#allocation4 + $0x2c0] sm:$0xff]  ;;  %v165_v29 = vrot.slane %v2002_v42, %v2096_v60 }
 0x116   :  { %v1684_v63 = vpop.eup %1683  ;;  %969 = vmatprep.mubr.f32.mxu0 %v1682_v62  ;;  %1703 = vtanh.f32 %v437_v57  ;;  %v440_v4 = vpop.f32.mrb[8].mxu0  ;;  %v873_v57 = vld [vmem:[#allocation4 + $0x338] sm:$0xff]  ;;  %v859_v62 = vld [vmem:[#allocation4 + $0x2c8] sm:$0xff]  ;;  %v2142_v30 = vld [vmem:[#allocation4 + $0x250] sm:$0xff] }
 0x117   :  { %v1686_v5 = vpop.eup %1685  ;;  %1059 = vmatprep.mubr.f32.mxu1 %v1684_v63  ;;  %970 = vmatmul.mubr.f32.vlgmr.msra.gmra.mrb[20].mxu0 %v1678_v45  ;;  %1705 = vtanh.f32 %v530_v58  ;;  %v441_v10 = vadd.f32 %v440_v4, %v272_v44  ;;  %v442_v11 = vpop.f32.mrb[9].mxu0  ;;  %v1615_v45 = vpack.c.bf16 %v839_v22, %v838_v21  ;;  %v2114_v58 = vsub.s32 6, %v1972_v31  ;;  %v890_v63 = vld [vmem:[#allocation4 + $0x3c0] sm:$0xff] }
 0x118   :  { %v535_v12 = vpop.f32.mrb[8].mxu1  ;;  %v1688_v13 = vpop.eup %1687  ;;  %1060 = vmatmul.mubr.f32.vlgmr.msra.gmra.mrb[20].mxu1 %v1680_v54  ;;  %1608 = vmatpush3.bf16.msra.mxu0 %v1607_v32  ;;  %1707 = vtanh.f32 %v532_v37  ;;  %v443_v14 = vadd.f32 %v442_v11, %v276_v0  ;;  %v841_v0 = vld [vmem:[#allocation4 + $0x238] sm:$0xff]  ;;  %v2111_v54 = vsub.s32 4, %v1972_v31  ;;  %v843_v11 = vld [vmem:[#allocation4 + $0x248] sm:$0xff]  ;;  %v157_v22 = vrot.slane %v2002_v42, %v2091_v61 }
 0x119   :  { %v536_v15 = vadd.f32 %v535_v12, %v280_v53  ;;  %v537_v16 = vpop.f32.mrb[9].mxu1  ;;  %v1690_v19 = vpop.eup %1689  ;;  %1640 = vmatpush3.bf16.msra.mxu1 %v1639_v39  ;;  %1610 = vmatprep.subr.bf16.mxu0 %v1609_v41  ;;  %1709 = vtanh.f32 %v441_v10  ;;  %v889_v39 = vld [vmem:[#allocation4 + $0x3b8] sm:$0xff]  ;;  %v872_v53 = vld [vmem:[#allocation4 + $0x330] sm:$0xff]  ;;  %v1621_v10 = vpack.c.bf16 %v859_v62, %v858_v59  ;;  %v2126_v12 = vld [vmem:[#allocation4 + $0x340] sm:$0xff] }
 0x11a   :  { %v538_v24 = vadd.f32 %v537_v16, %v284_v36  ;;  %v1692_v26 = vpop.eup %1691  ;;  %1642 = vmatprep.subr.bf16.mxu1 %v1641_v1  ;;  %1711 = vtanh.f32 %v443_v14  ;;  %974 = vmatprep.mubr.f32.mxu0 %v1688_v13  ;;  %v2106_v32 = vpop.f32.mrb[10].mxu0  ;;  %v1649_v56 = vpack.c.bf16 %v889_v39, %v888_v38  ;;  %v891_v1 = vld [vmem:[#allocation4 + $0x3c8] sm:$0xff]  ;;  %v1651_v40 = vpack.c.bf16 %v873_v57, %v872_v53  ;;  %v894_v57 = vld [vmem:[#allocation4 + $0x3e0] sm:$0xff] }
 0x11b   :  { %v1694_v33 = vpop.eup %1693  ;;  %1713 = vtanh.f32 %v536_v15  ;;  %975 = vmatmul.mubr.f32.gmra.mrb[22].mxu0 %v1686_v5  ;;  %1064 = vmatprep.mubr.f32.mxu1 %v1692_v26  ;;  %v608_v41 = vpop.f32.mrb[11].mxu0  ;;  %v1619_v5 = vpack.c.bf16 %v841_v0, %v840_v52  ;;  %v108_v9 = vrot.slane %v1980_v34, %v2111_v54  ;;  %v875_v13 = vld [vmem:[#allocation4 + $0x348] sm:$0xff]  ;;  %v116_v15 = vrot.slane %v1980_v34, %v2114_v58  ;;  %v862_v0 = vld [vmem:[#allocation4 + $0x2e0] sm:$0xff] }
 0x11c   :  { %v2108_v43 = vpop.f32.mrb[10].mxu1  ;;  %v1696_v44 = vpop.eup %1695  ;;  %1612 = vmatpush3.bf16.msra.mxu0 %v1611_v7  ;;  %1715 = vtanh.f32 %v538_v24  ;;  %1065 = vmatmul.mubr.f32.gmra.mrb[22].mxu1 %v1690_v19  ;;  %v609_v46 = vadd.f32 %v608_v41, %v112_v17  ;;  %v2120_v7 = vld [vmem:[#allocation4 + $0x240] sm:$0xff]  ;;  %v1653_v16 = vpack.c.bf16 %v891_v1, %v890_v63  ;;  %v860_v17 = vld [vmem:[#allocation4 + $0x2d0] sm:$0xff]  ;;  %v861_v19 = vld [vmem:[#allocation4 + $0x2d8] sm:$0xff]  ;;  %v1655_v28 = vpack.c.bf16 %v875_v13, %v2126_v12 }
 0x11d   :  { %v703_v47 = vpop.f32.mrb[11].mxu1  ;;  %v1698_v48 = vpop.eup %1697  ;;  %1644 = vmatpush3.bf16.msra.mxu1 %v1643_v8  ;;  %1614 = vmatprep.subr.bf16.mxu0 %v1613_v20  ;;  %v893_v24 = vld [vmem:[#allocation4 + $0x3d8] sm:$0xff]  ;;  %v1623_v34 = vpack.c.bf16 %v843_v11, %v2120_v7  ;;  %v607_v41 = vadd.f32 %v2106_v32, %v108_v9  ;;  %v863_v53 = vld [vmem:[#allocation4 + $0x2e8] sm:$0xff]  ;;  %v210_v1 = vrot.slane %v2016_v49, %v2096_v60  ;;  %v878_v9 = vld [vmem:[#allocation4 + $0x360] sm:$0xff] }
 0x11e   :  { %v704_v55 = vadd.f32 %v703_v47, %v120_v25  ;;  %v1700_v35 = vpop.eup %1699  ;;  %1646 = vmatprep.subr.bf16.mxu1 %v1645_v27  ;;  %1717 = vtanh.f32 %v609_v46  ;;  %979 = vmatprep.mubr.f32.mxu0 %v1696_v44  ;;  %v2116_v37 = vpop.f32.mrb[12].mxu0  ;;  %v153_v44 = vrot.slane %v2002_v42, %v2111_v54  ;;  %v2151_v46 = vld [vmem:[#allocation4 + $0x350] sm:$0xff]  ;;  %v877_v47 = vld [vmem:[#allocation4 + $0x358] sm:$0xff]  ;;  %v1657_v52 = vpack.c.bf16 %v893_v24, %v892_v23  ;;  %v895_v59 = vld [vmem:[#allocation4 + $0x3e8] sm:$0xff] }
 0x11f   :  { %v1702_v36 = vpop.eup %1701  ;;  %980 = vmatmul.mubr.f32.gmra.mrb[24].mxu0 %v1694_v33  ;;  %1069 = vmatprep.mubr.f32.mxu1 %v1700_v35  ;;  %v614_v2 = vpop.f32.mrb[13].mxu0  ;;  %v2144_v33 = vld [vmem:[#allocation4 + $0x258] sm:$0xff]  ;;  %v1659_v63 = vpack.c.bf16 %v877_v47, %v2151_v46  ;;  %v206_v12 = vrot.slane %v2016_v49, %v2114_v58  ;;  %v1661_v13 = vpack.c.bf16 %v895_v59, %v894_v57 }
 0x120   :  { %v2118_v3 = vpop.f32.mrb[12].mxu1  ;;  %v1704_v4 = vpop.eup %1703  ;;  %1616 = vmatpush3.bf16.msra.mxu0 %v1615_v45  ;;  %1719 = vtanh.f32 %v704_v55  ;;  %1070 = vmatmul.mubr.f32.gmra.mrb[24].mxu1 %v1698_v48  ;;  %v1625_v45 = vpack.c.bf16 %v861_v19, %v860_v17  ;;  %v615_v55 = vadd.f32 %v614_v2, %v157_v22  ;;  %v1627_v35 = vpack.c.bf16 %v2144_v33, %v2142_v30  ;;  %v846_v2 = vld [vmem:[#allocation4 + $0x260] sm:$0xff]  ;;  %v897_v22 = vld [vmem:[#allocation4 + $0x3f8] sm:$0xff]  ;;  %v848_v30 = vld [vmem:[#allocation4 + $0x270] sm:$0xff] }
 0x121   :  { %v2122_v31 = vpop.f32.mrb[13].mxu1  ;;  %v1706_v8 = vpop.eup %1705  ;;  %1648 = vmatpush3.bf16.msra.mxu1 %v1647_v50  ;;  %1618 = vmatprep.subr.bf16.mxu0 %v1617_v51  ;;  %v702_v50 = vadd.f32 %v2108_v43, %v116_v15  ;;  %v161_v51 = vrot.slane %v2002_v42, %v2114_v58  ;;  %1721 = vtanh.f32 %v607_v41  ;;  %v613_v7 = vadd.f32 %v2116_v37, %v153_v44  ;;  %v865_v15 = vld [vmem:[#allocation4 + $0x2f8] sm:$0xff]  ;;  %v880_v44 = vld [vmem:[#allocation4 + $0x370] sm:$0xff] }
 0x122   :  { %v1708_v14 = vpop.eup %1707  ;;  %1650 = vmatprep.subr.bf16.mxu1 %v1649_v56  ;;  %984 = vmatprep.mubr.f32.mxu0 %v1704_v4  ;;  %v2130_v20 = vpop.f32.mrb[14].mxu0  ;;  %v202_v56 = vrot.slane %v2016_v49, %v2091_v61  ;;  %v847_v4 = vld [vmem:[#allocation4 + $0x268] sm:$0xff]  ;;  %v247_v19 = vrot.slane %v2039_v6, %v2091_v61  ;;  %v849_v33 = vld [vmem:[#allocation4 + $0x278] sm:$0xff] }
 0x123   :  { %v1710_v21 = vpop.eup %1709  ;;  %985 = vmatmul.mubr.f32.gmra.mrb[26].mxu0 %v1702_v36  ;;  %1074 = vmatprep.mubr.f32.mxu1 %v1708_v14  ;;  %v2134_v25 = vpop.f32.mrb[15].mxu0  ;;  %v710_v36 = vadd.f32 %v2122_v31, %v165_v29  ;;  %v879_v31 = vld [vmem:[#allocation4 + $0x368] sm:$0xff]  ;;  %1723 = vtanh.f32 %v702_v50  ;;  %v708_v11 = vadd.f32 %v2118_v3, %v161_v51  ;;  %v864_v14 = vld [vmem:[#allocation4 + $0x2f0] sm:$0xff]  ;;  %v1631_v17 = vpack.c.bf16 %v847_v4, %v846_v2 }
 0x124   :  { %v2136_v26 = vpop.f32.mrb[14].mxu1  ;;  %v1712_v27 = vpop.eup %1711  ;;  %1620 = vmatpush3.bf16.msra.mxu0 %v1619_v5  ;;  %1075 = vmatmul.mubr.f32.gmra.mrb[26].mxu1 %v1706_v8  ;;  %v198_v8 = vrot.slane %v2016_v49, %v2111_v54  ;;  %1725 = vtanh.f32 %v615_v55  ;;  %v1663_v24 = vpack.c.bf16 %v879_v31, %v878_v9  ;;  %v1633_v29 = vpack.c.bf16 %v865_v15, %v864_v14  ;;  %v1312_v9 = vld [vmem:[%s2221_s4] ss:$0 sm:$0xff] }
 0x125   :  { %v2146_v38 = vpop.f32.mrb[15].mxu1  ;;  %v1714_v39 = vpop.eup %1713  ;;  %1652 = vmatpush3.bf16.msra.mxu1 %v1651_v40  ;;  %1622 = vmatprep.subr.bf16.mxu0 %v1621_v10  ;;  %v1629_v40 = vpack.c.bf16 %v863_v53, %v862_v0  ;;  %1727 = vtanh.f32 %v710_v36  ;;  %v300_v50 = vrot.slane %v2054_v18, %v2096_v60  ;;  %v296_v0 = vrot.slane %v2054_v18, %v2114_v58 }
 0x126   :  { %v1716_v48 = vpop.eup %1715  ;;  %1654 = vmatprep.subr.bf16.mxu1 %v1653_v16  ;;  %989 = vmatprep.mubr.f32.mxu0 %v1712_v27  ;;  %v2156_v32 = vpop.f32.mrb[16].mxu0  ;;  %v621_v16 = vadd.f32 %v2134_v25, %v202_v56  ;;  %v716_v49 = vadd.f32 %v2146_v38, %v210_v1  ;;  %v255_v27 = vrot.slane %v2039_v6, %v2096_v60  ;;  %1729 = vtanh.f32 %v613_v7 }
 0x127   :  { %990 = vmatmul.mubr.f32.gmra.mrb[28].mxu0 %v1710_v21  ;;  %1079 = vmatprep.mubr.f32.mxu1 %v1716_v48  ;;  %v626_v43 = vpop.f32.mrb[17].mxu0  ;;  %v2162_v62 = vpop.f32.mrb[16].mxu1  ;;  %v896_v21 = vld [vmem:[#allocation4 + $0x3f0] sm:$0xff]  ;;  %v619_v25 = vadd.f32 %v2130_v20, %v198_v8  ;;  %1731 = vtanh.f32 %v708_v11  ;;  %v251_v38 = vrot.slane %v2039_v6, %v2114_v58  ;;  %v292_v20 = vrot.slane %v2054_v18, %v2091_v61 }
 0x128   :  { %v1718_v42 = vpop.eup %1717  ;;  %1624 = vmatpush3.bf16.msra.mxu0 %v1623_v34  ;;  %1080 = vmatmul.mubr.f32.gmra.mrb[28].mxu1 %v1714_v39  ;;  %v721_v5 = vpop.f32.mrb[17].mxu1  ;;  %v714_v39 = vadd.f32 %v2136_v26, %v206_v12  ;;  %v1665_v41 = vpack.c.bf16 %v897_v22, %v896_v21  ;;  %1733 = vtanh.f32 %v621_v16  ;;  %v627_v46 = vadd.f32 %v626_v43, %v247_v19 }
 0x129   :  { %1656 = vmatpush3.bf16.msra.mxu1 %v1655_v28  ;;  %1626 = vmatprep.subr.bf16.mxu0 %v1625_v45  ;;  %v243_v28 = vrot.slane %v2039_v6, %v2111_v54  ;;  %v881_v45 = vld [vmem:[#allocation4 + $0x378] sm:$0xff]  ;;  %1735 = vtanh.f32 %v716_v49  ;;  %v722_v47 = vadd.f32 %v721_v5, %v255_v27  ;;  %v1635_v48 = vpack.c.bf16 %v849_v33, %v848_v30 }
 0x12a   :  { %v1720_v10 = vpop.eup %1719  ;;  %1658 = vmatprep.subr.bf16.mxu1 %v1657_v52  ;;  %1149 = vmatprep.mubr.f32.mxu0 %v1718_v42  ;;  %v2174_v37 = vpop.f32.mrb[18].mxu0  ;;  %1737 = vtanh.f32 %v619_v25  ;;  %v1667_v6 = vpack.c.bf16 %v881_v45, %v880_v44  ;;  %v720_v51 = vadd.f32 %v2162_v62, %v251_v38  ;;  %v288_v60 = vrot.slane %v2054_v18, %v2111_v54 }
 0x12b   :  { %1239 = vmatprep.mubr.f32.mxu1 %v1720_v10  ;;  %v632_v3 = vpop.f32.mrb[19].mxu0  ;;  %v725_v23 = vpop.f32.mrb[18].mxu1  ;;  %v625_v26 = vadd.f32 %v2156_v32, %v243_v28  ;;  %1739 = vtanh.f32 %v714_v39 }
 0x12c   :  { %1628 = vmatpush3.bf16.msra.mxu0 %v1627_v35  ;;  %v727_v34 = vpop.f32.mrb[19].mxu1  ;;  %v1722_v52 = vpop.eup %1721  ;;  %1741 = vtanh.f32 %v627_v46  ;;  %v633_v61 = vadd.f32 %v632_v3, %v292_v20  ;;  %v726_v57 = vadd.f32 %v725_v23, %v296_v0  ;;  %v631_v43 = vadd.f32 %v2174_v37, %v288_v60 }
 0x12d   :  { %1660 = vmatpush3.bf16.msra.mxu1 %v1659_v63  ;;  %1630 = vmatprep.subr.bf16.mxu0 %v1629_v40  ;;  %v1724_v53 = vpop.eup %1723  ;;  %1743 = vtanh.f32 %v722_v47  ;;  %v728_v55 = vadd.f32 %v727_v34, %v300_v50 }
 0x12e   :  { %1662 = vmatprep.subr.bf16.mxu1 %v1661_v13  ;;  %v1726_v32 = vpop.eup %1725  ;;  %1745 = vtanh.f32 %v625_v26 }
 0x12f   :  { %v1728_v35 = vpop.eup %1727  ;;  %1747 = vtanh.f32 %v720_v51 }
 0x130   :  { %1632 = vmatpush3.bf16.msra.mxu0 %v1631_v17  ;;  %v1730_v56 = vpop.eup %1729  ;;  %1749 = vtanh.f32 %v633_v61 }
 0x131   :  { %1664 = vmatpush3.bf16.msra.mxu1 %v1663_v24  ;;  %1634 = vmatprep.subr.bf16.mxu0 %v1633_v29  ;;  %v1732_v59 = vpop.eup %1731  ;;  %1751 = vtanh.f32 %v728_v55 }
 0x132   :  { %1666 = vmatprep.subr.bf16.mxu1 %v1665_v41  ;;  %v1734_v58 = vpop.eup %1733  ;;  %1753 = vtanh.f32 %v726_v57 }
 0x133   :  { %v1736_v62 = vpop.eup %1735  ;;  %1755 = vtanh.f32 %v631_v43 }
 0x134   :  { %1636 = vmatpush3.bf16.msra.mxu0 %v1635_v48  ;;  %v1738_v18 = vpop.eup %1737 }
 0x135   :  { %1668 = vmatpush3.bf16.msra.mxu1 %v1667_v6  ;;  %v1740_v54 = vpop.eup %1739 }
 0x136   :  { %v1742_v42 = vpop.eup %1741 }
 0x137   :  { %1150 = vmatmul.mubr.f32.vlgmr.msra.gmra.mrb[30].mxu0 %v1722_v52  ;;  %v1744_v36 = vpop.eup %1743 }
 0x138   :  { %1240 = vmatmul.mubr.f32.vlgmr.msra.gmra.mrb[30].mxu1 %v1724_v53  ;;  %1154 = vmatprep.mubr.f32.mxu0 %v1726_v32  ;;  %v1746_v63 = vpop.eup %1745 }
 0x139   :  { %1244 = vmatprep.mubr.f32.mxu1 %v1728_v35  ;;  %v1748_v1 = vpop.eup %1747 }
 0x13a   :  { %v1750_v2 = vpop.eup %1749 }
 0x13b   :  { %1155 = vmatmul.mubr.f32.gmra.mrb[32].mxu0 %v1730_v56  ;;  %v1752_v4 = vpop.eup %1751 }
 0x13c   :  { %1245 = vmatmul.mubr.f32.gmra.mrb[32].mxu1 %v1732_v59  ;;  %1159 = vmatprep.mubr.f32.mxu0 %v1734_v58  ;;  %v1754_v5 = vpop.eup %1753 }
 0x13d   :  { %1249 = vmatprep.mubr.f32.mxu1 %v1736_v62  ;;  %v1756_v7 = vpop.eup %1755 }
 0x13f   :  { %1160 = vmatmul.mubr.f32.gmra.mrb[34].mxu0 %v1738_v18 }
 0x140   :  { %1250 = vmatmul.mubr.f32.gmra.mrb[34].mxu1 %v1740_v54  ;;  %1164 = vmatprep.mubr.f32.mxu0 %v1742_v42 }
 0x141   :  { %1254 = vmatprep.mubr.f32.mxu1 %v1744_v36 }
 0x143   :  { %1165 = vmatmul.mubr.f32.gmra.mrb[36].mxu0 %v1746_v63 }
 0x144   :  { %1255 = vmatmul.mubr.f32.gmra.mrb[36].mxu1 %v1748_v1  ;;  %1169 = vmatprep.mubr.f32.mxu0 %v1750_v2 }
 0x145   :  { %1259 = vmatprep.mubr.f32.mxu1 %v1752_v4 }
 0x147   :  { %1170 = vmatmul.mubr.f32.gmra.mrb[38].mxu0 %v1756_v7 }
 0x148   :  { %1260 = vmatmul.mubr.f32.gmra.mrb[38].mxu1 %v1754_v5 }
 0x1ea   :  { %v1345_v8 = vpop.f32.mrb[20].mxu0 }
 0x1eb   :  { %v1392_v40 = vpop.f32.mrb[20].mxu1  ;;  %v1346_v31 = vpop.f32.mrb[21].mxu0 }
 0x1ec   :  { %v1347_v10 = vadd.f32 %v1346_v31, %v1345_v8  ;;  %v1393_v11 = vpop.f32.mrb[21].mxu1 }
 0x1ed   :  { %v1394_v12 = vadd.f32 %v1393_v11, %v1392_v40 }
 0x1ee   :  { %v972_v13 = vadd.f32 %v1347_v10, %v1312_v9  ;;  %v1348_v14 = vpop.f32.mrb[22].mxu0 }
 0x1ef   :  { %v1349_v15 = vpop.f32.mrb[23].mxu0  ;;  %v1395_v37 = vpop.f32.mrb[22].mxu1 }
 0x1f0   :  { %v1062_v16 = vadd.f32 %v1394_v12, %v972_v13  ;;  %v1350_v17 = vadd.f32 %v1349_v15, %v1348_v14  ;;  %v1396_v19 = vpop.f32.mrb[23].mxu1 }
 0x1f1   :  { %v1397_v21 = vadd.f32 %v1396_v19, %v1395_v37 }
 0x1f2   :  { %v977_v22 = vadd.f32 %v1350_v17, %v1312_v9  ;;  %v1351_v3 = vpop.f32.mrb[24].mxu0 }
 0x1f3   :  { %v1352_v23 = vpop.f32.mrb[25].mxu0  ;;  %v1398_v49 = vpop.f32.mrb[24].mxu1 }
 0x1f4   :  { %v1067_v24 = vadd.f32 %v1397_v21, %v977_v22  ;;  %v1353_v27 = vadd.f32 %v1352_v23, %v1351_v3  ;;  %v1399_v34 = vpop.f32.mrb[25].mxu1 }
 0x1f5   :  { %v1400_v25 = vadd.f32 %v1399_v34, %v1398_v49 }
 0x1f6   :  { %v982_v28 = vadd.f32 %v1353_v27, %v1312_v9  ;;  %v1354_v29 = vpop.f32.mrb[26].mxu0 }
 0x1f7   :  { %v1355_v30 = vpop.f32.mrb[27].mxu0  ;;  %v1401_v33 = vpop.f32.mrb[26].mxu1 }
 0x1f8   :  { %v1072_v39 = vadd.f32 %v1400_v25, %v982_v28  ;;  %v1356_v38 = vadd.f32 %v1355_v30, %v1354_v29  ;;  %v1402_v41 = vpop.f32.mrb[27].mxu1 }
 0x1f9   :  { %v1403_v44 = vadd.f32 %v1402_v41, %v1401_v33 }
 0x1fa   :  { %v987_v45 = vadd.f32 %v1356_v38, %v1312_v9  ;;  %v1357_v46 = vpop.f32.mrb[28].mxu0 }
 0x1fb   :  { %v1358_v20 = vpop.f32.mrb[29].mxu0  ;;  %v1404_v47 = vpop.f32.mrb[28].mxu1 }
 0x1fc   :  { %v1077_v48 = vadd.f32 %v1403_v44, %v987_v45  ;;  %v1359_v50 = vadd.f32 %v1358_v20, %v1357_v46  ;;  %v1405_v26 = vpop.f32.mrb[29].mxu1 }
 0x1fd   :  { %v1406_v6 = vadd.f32 %v1405_v26, %v1404_v47 }
 0x1fe   :  { %v992_v51 = vadd.f32 %v1359_v50, %v1312_v9 }
 0x200   :  { %v1082_v52 = vadd.f32 %v1406_v6, %v992_v51 }
 0x20a   :  { %v1439_v61 = vpop.f32.mrb[30].mxu0 }
 0x20b   :  { %v1486_v0 = vpop.f32.mrb[30].mxu1  ;;  %v1440_v53 = vpop.f32.mrb[31].mxu0 }
 0x20c   :  { %v1441_v60 = vadd.f32 %v1440_v53, %v1439_v61  ;;  %v1487_v55 = vpop.f32.mrb[31].mxu1 }
 0x20d   :  { %v1488_v32 = vadd.f32 %v1487_v55, %v1486_v0 }
 0x20e   :  { %v1152_v35 = vadd.f32 %v1441_v60, %v1062_v16  ;;  %v1442_v56 = vpop.f32.mrb[32].mxu0 }
 0x20f   :  { %v1489_v57 = vpop.f32.mrb[32].mxu1  ;;  %v1443_v59 = vpop.f32.mrb[33].mxu0 }
 0x210   :  { %v1242_v43 = vadd.f32 %v1488_v32, %v1152_v35  ;;  %v1444_v58 = vadd.f32 %v1443_v59, %v1442_v56  ;;  %v1490_v62 = vpop.f32.mrb[33].mxu1 }
 0x211   :  { %v1491_v18 = vadd.f32 %v1490_v62, %v1489_v57 }
 0x212   :  { %1265 = vst [vmem:[%s2222_s5] sm:$0xff] %v1242_v43  ;;  %v1157_v54 = vadd.f32 %v1444_v58, %v1067_v24  ;;  %v1445_v42 = vpop.f32.mrb[34].mxu0 }
 0x213   :  { %v1492_v36 = vpop.f32.mrb[34].mxu1  ;;  %v1446_v63 = vpop.f32.mrb[35].mxu0 }
 0x214   :  { %v1247_v1 = vadd.f32 %v1491_v18, %v1157_v54  ;;  %v1447_v2 = vadd.f32 %v1446_v63, %v1445_v42  ;;  %v1493_v4 = vpop.f32.mrb[35].mxu1 }
 0x215   :  { %v1494_v5 = vadd.f32 %v1493_v4, %v1492_v36 }
 0x216   :  { %1266 = vst [vmem:[%s2222_s5 + $0x8] sm:$0xff] %v1247_v1  ;;  %v1162_v7 = vadd.f32 %v1447_v2, %v1072_v39  ;;  %v1448_v8 = vpop.f32.mrb[36].mxu0 }
 0x217   :  { %v1495_v40 = vpop.f32.mrb[36].mxu1  ;;  %v1449_v9 = vpop.f32.mrb[37].mxu0 }
 0x218   :  { %v1252_v31 = vadd.f32 %v1494_v5, %v1162_v7  ;;  %v1450_v10 = vadd.f32 %v1449_v9, %v1448_v8  ;;  %v1496_v11 = vpop.f32.mrb[37].mxu1 }
 0x219   :  { %v1497_v12 = vadd.f32 %v1496_v11, %v1495_v40 }
 0x21a   :  { %1267 = vst [vmem:[%s2222_s5 + $0x10] sm:$0xff] %v1252_v31  ;;  %v1167_v13 = vadd.f32 %v1450_v10, %v1077_v48  ;;  %v1451_v14 = vpop.f32.mrb[38].mxu0 }
 0x21b   :  { %v1498_v15 = vpop.f32.mrb[38].mxu1  ;;  %v1452_v37 = vpop.f32.mrb[39].mxu0 }
 0x21c   :  { %v1257_v16 = vadd.f32 %v1497_v12, %v1167_v13  ;;  %v1453_v17 = vadd.f32 %v1452_v37, %v1451_v14  ;;  %v1499_v19 = vpop.f32.mrb[39].mxu1 }
 0x21d   :  { %v1500_v21 = vadd.f32 %v1499_v19, %v1498_v15 }
 0x21e   :  { %1268 = vst [vmem:[%s2222_s5 + $0x18] sm:$0xff] %v1257_v16  ;;  %v1172_v22 = vadd.f32 %v1453_v17, %v1082_v52 }
 0x220   :  { %v1262_v3 = vadd.f32 %v1500_v21, %v1172_v22 }
 0x222   :  { %1269 = vst [vmem:[%s2222_s5 + $0x20] sm:$0xff] %v1262_v3 }
 0x223   :  { %1274 = vsyncpa [#allocation3], 1 }
 0x224   :  { %1275 = vsyncpa [#allocation5], 1 }

</bundles_post_ra>
